<compile_context>
chip_gen: v6e
topology: v6e:2x2x1
jax: 0.10.0
libtpu: 0.0.40
codegen_flags: <defaults>
</compile_context>

<pallas_src>
import functools

import jax
import jax.numpy as jnp
from jax import lax
from jax.experimental import pallas as pl
from jax.experimental.pallas import tpu as pltpu

_LANES = 128
_F32_SUBLANES = 8
# Target ~4 MiB per input tile (8 MiB double-buffered): fits the default scoped
# VMEM on all generations and keeps the ~0.35 us per-grid-step overhead well
# under 10% of the tile's HBM stream time even at v7x bandwidth (~3.2 TB/s).
_TILE_BYTES = 4 * 1024 * 1024
# Packed sublane multiple per element size in bytes.
_SUBLANE_MULT = {4: 8, 2: 16, 1: 32}


def _cdiv(a, b):
    return -(-a // b)


def _round_up(n, m):
    return _cdiv(n, m) * m


def _num_tensorcores():
    """2 on v7x (2 TensorCores/chip), else 1.  Conservative fallback: 1."""
    try:
        kind = jax.devices()[0].device_kind.lower()
    except Exception:
        return 1
    return 2 if "v7" in kind else 1


def _sumsq_kernel(x_ref, o_ref, *, rows_total, row_tile, steps, num_blocks,
                  mask_last, num_par):
    """Accumulate per-(sublane, lane) partial sums of squares for one chunk."""
    p = pl.program_id(0)   # parallel chunk (v7x TensorCore split; size 1 otherwise)
    s = pl.program_id(1)   # reduction step within the chunk
    blk = p * steps + s    # logical block index

    @pl.when(s == 0)
    def _():
        o_ref[...] = jnp.zeros_like(o_ref)

    def accum(xv):
        sq = xv * xv
        # (row_tile, 128) -> (row_tile//8, 8, 128); leading-axis sum = pure VPU
        # adds into the resident (8, 128) f32 accumulator block.
        o_ref[...] += jnp.sum(
            sq.reshape(row_tile // _F32_SUBLANES, _F32_SUBLANES, _LANES), axis=0)

    # First block index that is NOT a plain full block.
    full_upto = num_blocks - 1 if mask_last else num_blocks
    all_full = (num_par * steps) <= full_upto  # static

    if all_full:
        # Every grid step maps to a full interior block: square + accumulate
        # only, no mask, no branch.
        accum(x_ref[...].astype(jnp.float32))
    else:
        if full_upto > 0:
            @pl.when(blk < full_upto)
            def _():
                accum(x_ref[...].astype(jnp.float32))

        if mask_last:
            @pl.when(blk == num_blocks - 1)
            def _():
                # Partial last block: zero rows past the logical extent before
                # squaring.  Only this single grid step pays the iota/where.
                row0 = (num_blocks - 1) * row_tile
                rows = lax.broadcasted_iota(jnp.int32, (row_tile, _LANES), 0) + row0
                xv = jnp.where(rows < rows_total,
                               x_ref[...].astype(jnp.float32), 0.0)
                accum(xv)
        # blk >= num_blocks (clamped duplicate block on an odd 2-core split)
        # falls through with no compute at all.


@functools.partial(jax.jit, static_argnames=("tile_bytes", "num_par"))
def norm_fro(x, *, tile_bytes=_TILE_BYTES, num_par=None):
    """Pallas equivalent of torch.norm(x, p='fro', dim=None, keepdim=False)."""
    if num_par is None:
        num_par = _num_tensorcores()

    out_dtype = x.dtype
    total = x.size
    if total == 0:
        return jnp.zeros((), out_dtype)

    flat = jnp.ravel(x)                              # free for contiguous inputs
    itemsize = jnp.dtype(x.dtype).itemsize
    sub = _SUBLANE_MULT.get(itemsize, _F32_SUBLANES)

    n_main = (total // _LANES) * _LANES
    rows_total = n_main // _LANES

    if rows_total == 0:
        # Fewer than 128 elements: not worth a kernel launch.
        ssq = jnp.sum(jnp.square(flat.astype(jnp.float32)))
        return jnp.sqrt(ssq).astype(out_dtype)

    if n_main == total:
        # Aligned: the reshape is a bitcast -- no slice, no copy, no tail.
        main = flat.reshape(rows_total, _LANES)
        tail_ssq = None
    else:
        # Unaligned: the prefix slice materializes a copy of the n_main-element
        # prefix before the kernel (extra HBM pass; only hit when total % 128
        # != 0).  The <128-element remainder is reduced here in the wrapper.
        main = lax.slice(flat, (0,), (n_main,)).reshape(rows_total, _LANES)
        tail_ssq = jnp.sum(jnp.square(flat[n_main:].astype(jnp.float32)))

    # Dtype-aware tile: constant ~tile_bytes per tile, rows a multiple of the
    # packed sublane count for this dtype.
    max_rows = max(tile_bytes // (_LANES * itemsize), sub)
    max_rows = (max_rows // sub) * sub
    row_tile = min(max_rows, _round_up(rows_total, sub))
    num_blocks = _cdiv(rows_total, row_tile)

    npar = min(num_par, num_blocks)
    steps = _cdiv(num_blocks, npar)
    mask_last = (rows_total % row_tile) != 0

    kernel = functools.partial(
        _sumsq_kernel,
        rows_total=rows_total,
        row_tile=row_tile,
        steps=steps,
        num_blocks=num_blocks,
        mask_last=mask_last,
        num_par=npar,
    )

    def in_index_map(p, s):
        # Clamp so a trailing grid step past the last real block (odd 2-core
        # split) still maps to a valid block; the kernel skips its compute.
        return (jnp.minimum(p * steps + s, num_blocks - 1), 0)

    partials = pl.pallas_call(
        kernel,
        out_shape=jax.ShapeDtypeStruct((npar * _F32_SUBLANES, _LANES), jnp.float32),
        grid_spec=pltpu.PrefetchScalarGridSpec(
            num_scalar_prefetch=0,
            grid=(npar, steps),
            in_specs=[pl.BlockSpec((row_tile, _LANES), in_index_map)],
            out_specs=pl.BlockSpec((_F32_SUBLANES, _LANES), lambda p, s: (p, 0)),
        ),
        compiler_params=pltpu.CompilerParams(
            # TODO(synk): on v7x, verify in a trace that the leading axis shards
            # across both TensorCores; switch to pltpu.CORE_PARALLEL if not.
            dimension_semantics=("parallel", "arbitrary"),
        ),
    )(main)

    # Final cross-block / cross-lane combine + sqrt (tiny) in the wrapper.
    ssq = jnp.sum(partials)
    if tail_ssq is not None:
        ssq = ssq + tail_ssq
    return jnp.sqrt(ssq).astype(out_dtype)


if __name__ == "__main__":
    key = jax.random.PRNGKey(0)

    # Primary check: NCHW shape implied by the module usage.  Aligned total
    # (2048 % 128 == 0) -> bitcast reshape, single full block, no mask.
    x = jax.random.normal(key, (2, 4, 16, 16), dtype=jnp.float32)
    result = norm_fro(x)
    jax.block_until_ready(result)
    ref = jnp.sqrt(jnp.sum(jnp.square(x)))
    assert result.shape == ()
    assert jnp.allclose(result, ref, rtol=1e-5, atol=1e-5), (result, ref)

    # Unaligned size: wrapper tail + gated in-kernel last-block mask.
    x2 = jax.random.normal(jax.random.PRNGKey(1), (3, 5, 7, 11), dtype=jnp.float32)
    r2 = norm_fro(x2)
    jax.block_until_ready(r2)
    ref2 = jnp.sqrt(jnp.sum(jnp.square(x2)))
    assert jnp.allclose(r2, ref2, rtol=1e-5, atol=1e-5), (r2, ref2)

    # Multi-block path with a forced small tile and a 2-way split: 9 blocks ->
    # full interior blocks, one masked partial last block, one skipped
    # duplicate block.  (Small input; small tile only to exercise the path.)
    x3 = jax.random.normal(jax.random.PRNGKey(2), (2, 4, 110, 160), dtype=jnp.float32)
    r3 = norm_fro(x3, tile_bytes=64 * 1024, num_par=2)
    jax.block_until_ready(r3)
    ref3 = jnp.sqrt(jnp.sum(jnp.square(x3)))
    assert jnp.allclose(r3, ref3, rtol=1e-5, atol=1e-5), (r3, ref3)

    # bf16 input: exercises dtype-aware (16, 128) sublane rounding.
    x4 = jax.random.normal(jax.random.PRNGKey(3), (2, 4, 16, 16)).astype(jnp.bfloat16)
    r4 = norm_fro(x4)
    jax.block_until_ready(r4)
    ref4 = jnp.sqrt(jnp.sum(jnp.square(x4.astype(jnp.float32))))
    assert jnp.allclose(r4.astype(jnp.float32), ref4, rtol=1e-2, atol=1e-2), (r4, ref4)

    print("KERNEL_OK")
</pallas_src>

<mosaic_0001>
module attributes {stable_mosaic.version = 11 : i64} {
  func.func @_sumsq_kernel(%arg0: i32, %arg1: i32, %arg2: memref<16x128xf32, #tpu.memory_space<vmem>>, %arg3: memref<8x128xf32, #tpu.memory_space<vmem>>) attributes {dimension_semantics = [#tpu.dimension_semantics<parallel>, #tpu.dimension_semantics<arbitrary>], iteration_bounds = array<i64: 1, 1>, scalar_prefetch = 0 : i64, scratch_operands = 0 : i64, tpu.core_type = #tpu.core_type<tc>, window_params = [{transform_indices = @transform_0, window_bounds = array<i64: 16, 128>}, {transform_indices = @transform_1, window_bounds = array<i64: 8, 128>}]} {
    %c0_i32 = arith.constant 0 : i32
    %0 = arith.cmpi eq, %arg1, %c0_i32 : i32
    %1 = arith.extui %0 : i1 to i32
    %c0_i32_0 = arith.constant 0 : i32
    %2 = arith.cmpi ne, %1, %c0_i32_0 : i32
    scf.if %2 {
      %cst_6 = arith.constant 0.000000e+00 : f32
      %10 = vector.broadcast %cst_6 : f32 to vector<8x128xf32>
      %c0_7 = arith.constant 0 : index
      %c0_8 = arith.constant 0 : index
      %11 = vector.load %arg3[%c0_7, %c0_8] : memref<8x128xf32, #tpu.memory_space<vmem>>, vector<8x128xf32>
      tpu.vector_store %arg3[%c0_7, %c0_8], %10 {strides = array<i32>} : memref<8x128xf32, #tpu.memory_space<vmem>>, vector<8x128xf32>,
    } else {
    }
    %c0 = arith.constant 0 : index
    %c0_1 = arith.constant 0 : index
    %3 = vector.load %arg2[%c0, %c0_1] : memref<16x128xf32, #tpu.memory_space<vmem>>, vector<16x128xf32>
    %4 = arith.mulf %3, %3 : vector<16x128xf32>
    %c0_2 = arith.constant 0 : index
    %c0_3 = arith.constant 0 : index
    %5 = vector.load %arg3[%c0_2, %c0_3] : memref<8x128xf32, #tpu.memory_space<vmem>>, vector<8x128xf32>
    %6 = vector.shape_cast %4 : vector<16x128xf32> to vector<2x8x128xf32>
    %cst = arith.constant dense<0.000000e+00> : vector<8x128xf32>
    %7 = vector.multi_reduction <add>, %6, %cst [0] : vector<2x8x128xf32> to vector<8x128xf32>
    %8 = arith.addf %5, %7 : vector<8x128xf32>
    %c0_4 = arith.constant 0 : index
    %c0_5 = arith.constant 0 : index
    %9 = vector.load %arg3[%c0_4, %c0_5] : memref<8x128xf32, #tpu.memory_space<vmem>>, vector<8x128xf32>
    tpu.vector_store %arg3[%c0_4, %c0_5], %8 {strides = array<i32>} : memref<8x128xf32, #tpu.memory_space<vmem>>, vector<8x128xf32>,
    return
  }
  func.func @transform_0(%arg0: i32, %arg1: i32) -> (i32, i32) {
    %c1_i32 = arith.constant 1 : i32
    %0 = arith.muli %arg0, %c1_i32 : i32
    %1 = arith.addi %0, %arg1 : i32
    %c0_i32 = arith.constant 0 : i32
    %2 = arith.minsi %1, %c0_i32 : i32
    %c0_i32_0 = arith.constant 0 : i32
    %c0_i32_1 = arith.constant 0 : i32
    return %2, %c0_i32_0 : i32, i32
  }
  func.func @transform_1(%arg0: i32, %arg1: i32) -> (i32, i32) {
    %c0_i32 = arith.constant 0 : i32
    %c0_i32_0 = arith.constant 0 : i32
    return %arg0, %c0_i32 : i32, i32
  }
}

</mosaic_0001>

<bundles_post_ra>
// kernel: norm_fro.1
= control target key start
LH: loop header
LB: loop body
LE: loop exit
PB: predicated region body
PF: predicated region fallthrough
CT: control target
= control target key end

     0   :  { %s83_s0 = inlined_call_operand.vmem [shape: f32[16,128], index: 0, kind: input, shape index: {}]   ;;  %s84_s1 = inlined_call_operand.vmem [shape: f32[8,128], index: 1, kind: output, shape index: {}]  }
   0x1   :  { %v45_v0 = vld [vmem:[%s83_s0] sm:$0xff]  ;;  %v46_v1 = vld [vmem:[%s83_s0 + $0x8] sm:$0xff] }
   0x2   :  { %v47_v2 = vmul.f32 %v45_v0, %v45_v0  ;;  %v48_v3 = vmul.f32 %v46_v1, %v46_v1 }
   0x4   :  { %v50_v4 = vadd.f32 %v48_v3, %v47_v2 }
   0x6   :  { %52 = vst [vmem:[%s84_s1] sm:$0xff] %v50_v4 }

</bundles_post_ra>
